<compile_context>
chip_gen: v6e
topology: v6e:2x2x1
jax: 0.10.0
libtpu: 0.0.40
codegen_flags: <defaults>
</compile_context>

<pallas_src>
import functools

import jax
import jax.numpy as jnp
from jax.experimental import pallas as pl
from jax.experimental.pallas import tpu as pltpu


# ---------------------------------------------------------------------------
# Fused kernel: conv1+bn1+relu -> conv2+bn2 -> +identity -> relu
# ---------------------------------------------------------------------------
def _basic_block_kernel(x_ref, w1_ref, b1_ref, w2_ref, b2_ref, o_ref,
                        pad_ref, xcol_ref, *, H, W):
    """One batch element per grid step, channel-major (C, H*W) layout.

    x_ref   : (1, C, H*W)        input tile (also the residual identity)
    w1_ref  : (C, 9*C)           conv1 weights, BN1 scale folded in (compute dtype)
    b1_ref  : (C, 1)             folded BN1 bias (f32)
    w2_ref  : (C, 9*C)           conv2 weights, BN2 scale folded in (compute dtype)
    b2_ref  : (C, 1)             folded BN2 bias (f32)
    o_ref   : (1, C, H*W)        output tile
    pad_ref : VMEM (C, H*W + 2*(W+1)) f32          flat zero-haloed staging buf
    xcol_ref: VMEM (9*C, H*W) compute-dtype        im2col matrix
    """
    HW = H * W
    P = W + 1                       # flat-index halo on each side
    C = x_ref.shape[1]

    x = x_ref[0].astype(jnp.float32)                         # (C, HW)

    # --- per-grid-step constants (shared by both convs) -------------------
    # Column-validity masks for the dx = -1 / +1 taps (row/dy halo is covered
    # by the zero border of pad_ref; dx wraparound into adjacent rows is
    # masked here).
    col = jax.lax.broadcasted_iota(jnp.int32, (1, HW), 1) % W
    mask_l = col >= 1               # valid lanes for dx = -1
    mask_r = col < (W - 1)          # valid lanes for dx = +1

    # Zero the halos once; conv staging only rewrites the inner [P:P+HW] span.
    pad_ref[:, :P] = jnp.zeros((C, P), jnp.float32)
    pad_ref[:, P + HW:] = jnp.zeros((C, P), jnp.float32)

    def conv3x3_bn(inp, w, b):
        """conv3x3 (stride=1, pad=1) with BN scale folded into w, plus bias b.

        inp: (C, HW) f32 value.  Returns (C, HW) f32 pre-activation.
        """
        # Stage the input into the flat zero-haloed buffer.
        pad_ref[:, P:P + HW] = inp

        # Build the im2col matrix (9*C, HW): tap t = 3*ky + kx occupies rows
        # [t*C, (t+1)*C).  Stored directly in the MXU compute dtype.
        for ky in range(3):
            for kx in range(3):
                dy, dx = ky - 1, kx - 1
                t = 3 * ky + kx
                s = P + dy * W + dx
                xs = pad_ref[:, s:s + HW]                    # (C, HW) f32
                if dx == -1:
                    xs = jnp.where(mask_l, xs, 0.0)
                elif dx == 1:
                    xs = jnp.where(mask_r, xs, 0.0)
                xcol_ref[t * C:(t + 1) * C, :] = xs.astype(xcol_ref.dtype)

        # Single MXU matmul with K = 9*C; f32 accumulation.
        acc = jnp.dot(w, xcol_ref[...], preferred_element_type=jnp.float32)
        return acc + b                                       # (C, HW) f32

    mid = jnp.maximum(conv3x3_bn(x, w1_ref[...], b1_ref[...]), 0.0)
    y = conv3x3_bn(mid, w2_ref[...], b2_ref[...])
    y = y + x                                                # residual in f32
    o_ref[0] = jnp.maximum(y, 0.0).astype(o_ref.dtype)


# ---------------------------------------------------------------------------
# Wrapper
# ---------------------------------------------------------------------------
def _fold_conv_bn(w_oihw, gamma, beta, mean, var, eps, compute_dtype):
    """Fold eval-mode BN into the conv: returns ((Cout, 9*Cin) weights, bias)."""
    scale = gamma / jnp.sqrt(var + eps)                      # (Cout,)
    bias = (beta - mean * scale).astype(jnp.float32)         # (Cout,)
    w = w_oihw * scale[:, None, None, None]                  # scale per out-ch
    # OIHW (Cout, Cin, 3, 3) -> (Cout, ky, kx, Cin) -> (Cout, 9*Cin)
    w = jnp.transpose(w, (0, 2, 3, 1)).reshape(w.shape[0], -1)
    return w.astype(compute_dtype), bias.reshape(-1, 1)


def basic_block_forward(x_nchw, params, *, compute_dtype=None, eps=1e-5):
    """BasicBlock.forward (stride=1, downsample=None). Input/output NCHW."""
    N, C, H, W = x_nchw.shape
    HW = H * W
    cdt = compute_dtype if compute_dtype is not None else x_nchw.dtype

    w1, b1 = _fold_conv_bn(params["w1"], params["g1"], params["b1"],
                           params["m1"], params["v1"], eps, cdt)
    w2, b2 = _fold_conv_bn(params["w2"], params["g2"], params["b2"],
                           params["m2"], params["v2"], eps, cdt)
    Cout = w1.shape[0]
    assert Cout == C, "BasicBlock with stride=1/downsample=None needs planes == inplanes"

    # NCHW is already channel-major: contiguous reshape, no transpose.
    x3 = x_nchw.reshape(N, C, HW)

    kernel = functools.partial(_basic_block_kernel, H=H, W=W)

    out = pl.pallas_call(
        kernel,
        out_shape=jax.ShapeDtypeStruct((N, C, HW), x_nchw.dtype),
        grid_spec=pltpu.PrefetchScalarGridSpec(
            num_scalar_prefetch=0,
            grid=(N,),
            in_specs=[
                pl.BlockSpec((1, C, HW), lambda n: (n, 0, 0)),     # x / identity
                pl.BlockSpec((Cout, 9 * C), lambda n: (0, 0)),     # w1 (folded)
                pl.BlockSpec((Cout, 1), lambda n: (0, 0)),         # b1
                pl.BlockSpec((Cout, 9 * C), lambda n: (0, 0)),     # w2 (folded)
                pl.BlockSpec((Cout, 1), lambda n: (0, 0)),         # b2
            ],
            out_specs=pl.BlockSpec((1, Cout, HW), lambda n: (n, 0, 0)),
            scratch_shapes=[
                pltpu.VMEM((C, HW + 2 * (W + 1)), jnp.float32),    # flat halo buf
                pltpu.VMEM((9 * C, HW), w1.dtype),                 # im2col (compute dtype)
            ],
        ),
        compiler_params=pltpu.CompilerParams(
            dimension_semantics=("parallel",),
            vmem_limit_bytes=32 * 1024 * 1024,
        ),
    )(x3, w1, b1, w2, b2)

    return out.reshape(N, Cout, H, W)


# ---------------------------------------------------------------------------
# Reference (pure JAX) for correctness check
# ---------------------------------------------------------------------------
def _ref_forward(x_nchw, params, eps=1e-5):
    def conv(x, w):  # NCHW, OIHW, stride 1, pad 1
        return jax.lax.conv_general_dilated(
            x, w, window_strides=(1, 1), padding=((1, 1), (1, 1)),
            dimension_numbers=("NCHW", "OIHW", "NCHW"))

    def bn(x, g, b, m, v):
        g, b, m, v = (a.reshape(1, -1, 1, 1) for a in (g, b, m, v))
        return (x - m) / jnp.sqrt(v + eps) * g + b

    out = jax.nn.relu(bn(conv(x_nchw, params["w1"]),
                         params["g1"], params["b1"], params["m1"], params["v1"]))
    out = bn(conv(out, params["w2"]),
             params["g2"], params["b2"], params["m2"], params["v2"])
    return jax.nn.relu(out + x_nchw)


# ---------------------------------------------------------------------------
if __name__ == "__main__":
    key = jax.random.PRNGKey(0)
    ks = jax.random.split(key, 9)

    N, C, H, W = 2, 8, 16, 16          # inplanes = planes = 8, stride = 1
    x = jax.random.normal(ks[0], (N, C, H, W), jnp.float32)

    params = {
        "w1": jax.random.normal(ks[1], (C, C, 3, 3), jnp.float32) * 0.1,
        "w2": jax.random.normal(ks[2], (C, C, 3, 3), jnp.float32) * 0.1,
        "g1": 1.0 + 0.1 * jax.random.normal(ks[3], (C,), jnp.float32),
        "b1": 0.1 * jax.random.normal(ks[4], (C,), jnp.float32),
        "m1": 0.1 * jax.random.normal(ks[5], (C,), jnp.float32),
        "v1": jnp.abs(jax.random.normal(ks[6], (C,), jnp.float32)) + 0.5,
        "g2": 1.0 + 0.1 * jax.random.normal(ks[7], (C,), jnp.float32),
        "b2": 0.1 * jax.random.normal(ks[8], (C,), jnp.float32),
        "m2": jnp.zeros((C,), jnp.float32),
        "v2": jnp.ones((C,), jnp.float32),
    }

    ref = jax.block_until_ready(_ref_forward(x, params))

    # f32 path: exact module semantics (eval-mode BN), tight tolerance.
    out = jax.block_until_ready(basic_block_forward(x, params))
    assert out.shape == (N, C, H, W)
    assert jnp.allclose(out, ref, atol=1e-4, rtol=1e-4), \
        f"f32 max abs err {jnp.max(jnp.abs(out - ref))}"

    # bf16-MXU path (f32 accumulation / epilogue): loose tolerance sanity check.
    out_bf16 = jax.block_until_ready(
        basic_block_forward(x, params, compute_dtype=jnp.bfloat16))
    assert out_bf16.shape == (N, C, H, W)
    assert jnp.allclose(out_bf16, ref, atol=2e-1, rtol=2e-1), \
        f"bf16 max abs err {jnp.max(jnp.abs(out_bf16 - ref))}"

    print("KERNEL_OK")
</pallas_src>

<mosaic_0001>
module attributes {stable_mosaic.version = 11 : i64} {
  func.func @_basic_block_kernel(%arg0: i32, %arg1: memref<1x8x256xf32, #tpu.memory_space<vmem>>, %arg2: memref<8x72xf32, #tpu.memory_space<vmem>>, %arg3: memref<8x1xf32, #tpu.memory_space<vmem>>, %arg4: memref<8x72xf32, #tpu.memory_space<vmem>>, %arg5: memref<8x1xf32, #tpu.memory_space<vmem>>, %arg6: memref<1x8x256xf32, #tpu.memory_space<vmem>>, %arg7: memref<8x290xf32, #tpu.memory_space<vmem>>, %arg8: memref<72x256xf32, #tpu.memory_space<vmem>>) attributes {dimension_semantics = [#tpu.dimension_semantics<parallel>], iteration_bounds = array<i64: 2>, scalar_prefetch = 0 : i64, scratch_operands = 2 : i64, tpu.core_type = #tpu.core_type<tc>, window_params = [{transform_indices = @transform_0, window_bounds = array<i64: 1, 8, 256>}, {pipeline_mode = #tpu.pipeline_mode<synchronous>, transform_indices = @transform_1, window_bounds = array<i64: 8, 72>}, {pipeline_mode = #tpu.pipeline_mode<synchronous>, transform_indices = @transform_2, window_bounds = array<i64: 8, 1>}, {pipeline_mode = #tpu.pipeline_mode<synchronous>, transform_indices = @transform_3, window_bounds = array<i64: 8, 72>}, {pipeline_mode = #tpu.pipeline_mode<synchronous>, transform_indices = @transform_4, window_bounds = array<i64: 8, 1>}, {transform_indices = @transform_5, window_bounds = array<i64: 1, 8, 256>}]} {
    %c0 = arith.constant 0 : index
    %c0_0 = arith.constant 0 : index
    %c0_1 = arith.constant 0 : index
    %0 = vector.load %arg1[%c0, %c0_0, %c0_1] : memref<1x8x256xf32, #tpu.memory_space<vmem>>, vector<1x8x256xf32>
    %1 = vector.shape_cast %0 : vector<1x8x256xf32> to vector<8x256xf32>
    %2 = tpu.iota {dimensions = array<i32: 1>} : vector<1x256xi32>
    %c16_i32 = arith.constant 16 : i32
    %c0_i32 = arith.constant 0 : i32
    %3 = arith.cmpi eq, %c16_i32, %c0_i32 : i32
    %c1_i32 = arith.constant 1 : i32
    %4 = arith.select %3, %c1_i32, %c16_i32 : i32
    %5 = vector.broadcast %4 : i32 to vector<1x256xi32>
    %6 = arith.remsi %2, %5 : vector<1x256xi32>
    %c0_i32_2 = arith.constant 0 : i32
    %7 = vector.broadcast %c0_i32_2 : i32 to vector<1x256xi32>
    %8 = arith.cmpi ne, %6, %7 : vector<1x256xi32>
    %c0_i32_3 = arith.constant 0 : i32
    %9 = vector.broadcast %c0_i32_3 : i32 to vector<1x256xi32>
    %10 = arith.cmpi slt, %6, %9 : vector<1x256xi32>
    %c0_i32_4 = arith.constant 0 : i32
    %11 = arith.cmpi slt, %4, %c0_i32_4 : i32
    %12 = vector.broadcast %11 : i1 to vector<1x256xi1>
    %13 = vector.broadcast %12 : vector<1x256xi1> to vector<1x256xi1>
    %14 = arith.xori %10, %13 : vector<1x256xi1>
    %15 = arith.andi %14, %8 : vector<1x256xi1>
    %16 = vector.broadcast %4 : i32 to vector<1x256xi32>
    %17 = arith.addi %6, %16 : vector<1x256xi32>
    %18 = arith.select %15, %17, %6 : vector<1x256xi1>, vector<1x256xi32>
    %c1_i32_5 = arith.constant 1 : i32
    %19 = vector.broadcast %c1_i32_5 : i32 to vector<1x256xi32>
    %20 = arith.cmpi sge, %18, %19 : vector<1x256xi32>
    %c15_i32 = arith.constant 15 : i32
    %21 = vector.broadcast %c15_i32 : i32 to vector<1x256xi32>
    %22 = arith.cmpi slt, %18, %21 : vector<1x256xi32>
    %cst = arith.constant 0.000000e+00 : f32
    %23 = vector.broadcast %cst : f32 to vector<8x17xf32>
    %c0_6 = arith.constant 0 : index
    %c0_7 = arith.constant 0 : index
    %24 = vector.load %arg7[%c0_6, %c0_7] : memref<8x290xf32, #tpu.memory_space<vmem>>, vector<8x17xf32>
    tpu.vector_store %arg7[%c0_6, %c0_7], %23 {strides = array<i32>} : memref<8x290xf32, #tpu.memory_space<vmem>>, vector<8x17xf32>,
    %cst_8 = arith.constant 0.000000e+00 : f32
    %25 = vector.broadcast %cst_8 : f32 to vector<8x17xf32>
    %c0_9 = arith.constant 0 : index
    %c273 = arith.constant 273 : index
    %26 = vector.load %arg7[%c0_9, %c273] : memref<8x290xf32, #tpu.memory_space<vmem>>, vector<8x17xf32>
    tpu.vector_store %arg7[%c0_9, %c273], %25 {strides = array<i32>} : memref<8x290xf32, #tpu.memory_space<vmem>>, vector<8x17xf32>,
    %c0_10 = arith.constant 0 : index
    %c0_11 = arith.constant 0 : index
    %27 = vector.load %arg2[%c0_10, %c0_11] : memref<8x72xf32, #tpu.memory_space<vmem>>, vector<8x72xf32>
    %c0_12 = arith.constant 0 : index
    %c0_13 = arith.constant 0 : index
    %28 = vector.load %arg3[%c0_12, %c0_13] : memref<8x1xf32, #tpu.memory_space<vmem>>, vector<8x1xf32>
    %c0_14 = arith.constant 0 : index
    %c17 = arith.constant 17 : index
    %29 = vector.load %arg7[%c0_14, %c17] : memref<8x290xf32, #tpu.memory_space<vmem>>, vector<8x256xf32>
    tpu.vector_store %arg7[%c0_14, %c17], %1 {strides = array<i32>} : memref<8x290xf32, #tpu.memory_space<vmem>>, vector<8x256xf32>,
    %c0_15 = arith.constant 0 : index
    %c0_16 = arith.constant 0 : index
    %30 = vector.load %arg7[%c0_15, %c0_16] : memref<8x290xf32, #tpu.memory_space<vmem>>, vector<8x256xf32>
    %cst_17 = arith.constant 0.000000e+00 : f32
    %31 = vector.shape_cast %20 : vector<1x256xi1> to vector<1x256xi1>
    %32 = vector.broadcast %31 : vector<1x256xi1> to vector<8x256xi1>
    %33 = vector.broadcast %cst_17 : f32 to vector<8x256xf32>
    %34 = arith.select %32, %30, %33 : vector<8x256xi1>, vector<8x256xf32>
    %c0_18 = arith.constant 0 : index
    %c0_19 = arith.constant 0 : index
    %35 = vector.load %arg8[%c0_18, %c0_19] : memref<72x256xf32, #tpu.memory_space<vmem>>, vector<8x256xf32>
    tpu.vector_store %arg8[%c0_18, %c0_19], %34 {strides = array<i32>} : memref<72x256xf32, #tpu.memory_space<vmem>>, vector<8x256xf32>,
    %c0_20 = arith.constant 0 : index
    %c1 = arith.constant 1 : index
    %36 = vector.load %arg7[%c0_20, %c1] : memref<8x290xf32, #tpu.memory_space<vmem>>, vector<8x256xf32>
    %c8 = arith.constant 8 : index
    %c0_21 = arith.constant 0 : index
    %37 = vector.load %arg8[%c8, %c0_21] : memref<72x256xf32, #tpu.memory_space<vmem>>, vector<8x256xf32>
    tpu.vector_store %arg8[%c8, %c0_21], %36 {strides = array<i32>} : memref<72x256xf32, #tpu.memory_space<vmem>>, vector<8x256xf32>,
    %c0_22 = arith.constant 0 : index
    %c2 = arith.constant 2 : index
    %38 = vector.load %arg7[%c0_22, %c2] : memref<8x290xf32, #tpu.memory_space<vmem>>, vector<8x256xf32>
    %cst_23 = arith.constant 0.000000e+00 : f32
    %39 = vector.shape_cast %22 : vector<1x256xi1> to vector<1x256xi1>
    %40 = vector.broadcast %39 : vector<1x256xi1> to vector<8x256xi1>
    %41 = vector.broadcast %cst_23 : f32 to vector<8x256xf32>
    %42 = arith.select %40, %38, %41 : vector<8x256xi1>, vector<8x256xf32>
    %c16 = arith.constant 16 : index
    %c0_24 = arith.constant 0 : index
    %43 = vector.load %arg8[%c16, %c0_24] : memref<72x256xf32, #tpu.memory_space<vmem>>, vector<8x256xf32>
    tpu.vector_store %arg8[%c16, %c0_24], %42 {strides = array<i32>} : memref<72x256xf32, #tpu.memory_space<vmem>>, vector<8x256xf32>,
    %c0_25 = arith.constant 0 : index
    %c16_26 = arith.constant 16 : index
    %44 = vector.load %arg7[%c0_25, %c16_26] : memref<8x290xf32, #tpu.memory_space<vmem>>, vector<8x256xf32>
    %cst_27 = arith.constant 0.000000e+00 : f32
    %45 = vector.shape_cast %20 : vector<1x256xi1> to vector<1x256xi1>
    %46 = vector.broadcast %45 : vector<1x256xi1> to vector<8x256xi1>
    %47 = vector.broadcast %cst_27 : f32 to vector<8x256xf32>
    %48 = arith.select %46, %44, %47 : vector<8x256xi1>, vector<8x256xf32>
    %c24 = arith.constant 24 : index
    %c0_28 = arith.constant 0 : index
    %49 = vector.load %arg8[%c24, %c0_28] : memref<72x256xf32, #tpu.memory_space<vmem>>, vector<8x256xf32>
    tpu.vector_store %arg8[%c24, %c0_28], %48 {strides = array<i32>} : memref<72x256xf32, #tpu.memory_space<vmem>>, vector<8x256xf32>,
    %c0_29 = arith.constant 0 : index
    %c17_30 = arith.constant 17 : index
    %50 = vector.load %arg7[%c0_29, %c17_30] : memref<8x290xf32, #tpu.memory_space<vmem>>, vector<8x256xf32>
    %c32 = arith.constant 32 : index
    %c0_31 = arith.constant 0 : index
    %51 = vector.load %arg8[%c32, %c0_31] : memref<72x256xf32, #tpu.memory_space<vmem>>, vector<8x256xf32>
    tpu.vector_store %arg8[%c32, %c0_31], %50 {strides = array<i32>} : memref<72x256xf32, #tpu.memory_space<vmem>>, vector<8x256xf32>,
    %c0_32 = arith.constant 0 : index
    %c18 = arith.constant 18 : index
    %52 = vector.load %arg7[%c0_32, %c18] : memref<8x290xf32, #tpu.memory_space<vmem>>, vector<8x256xf32>
    %cst_33 = arith.constant 0.000000e+00 : f32
    %53 = vector.shape_cast %22 : vector<1x256xi1> to vector<1x256xi1>
    %54 = vector.broadcast %53 : vector<1x256xi1> to vector<8x256xi1>
    %55 = vector.broadcast %cst_33 : f32 to vector<8x256xf32>
    %56 = arith.select %54, %52, %55 : vector<8x256xi1>, vector<8x256xf32>
    %c40 = arith.constant 40 : index
    %c0_34 = arith.constant 0 : index
    %57 = vector.load %arg8[%c40, %c0_34] : memref<72x256xf32, #tpu.memory_space<vmem>>, vector<8x256xf32>
    tpu.vector_store %arg8[%c40, %c0_34], %56 {strides = array<i32>} : memref<72x256xf32, #tpu.memory_space<vmem>>, vector<8x256xf32>,
    %c0_35 = arith.constant 0 : index
    %c32_36 = arith.constant 32 : index
    %58 = vector.load %arg7[%c0_35, %c32_36] : memref<8x290xf32, #tpu.memory_space<vmem>>, vector<8x256xf32>
    %cst_37 = arith.constant 0.000000e+00 : f32
    %59 = vector.shape_cast %20 : vector<1x256xi1> to vector<1x256xi1>
    %60 = vector.broadcast %59 : vector<1x256xi1> to vector<8x256xi1>
    %61 = vector.broadcast %cst_37 : f32 to vector<8x256xf32>
    %62 = arith.select %60, %58, %61 : vector<8x256xi1>, vector<8x256xf32>
    %c48 = arith.constant 48 : index
    %c0_38 = arith.constant 0 : index
    %63 = vector.load %arg8[%c48, %c0_38] : memref<72x256xf32, #tpu.memory_space<vmem>>, vector<8x256xf32>
    tpu.vector_store %arg8[%c48, %c0_38], %62 {strides = array<i32>} : memref<72x256xf32, #tpu.memory_space<vmem>>, vector<8x256xf32>,
    %c0_39 = arith.constant 0 : index
    %c33 = arith.constant 33 : index
    %64 = vector.load %arg7[%c0_39, %c33] : memref<8x290xf32, #tpu.memory_space<vmem>>, vector<8x256xf32>
    %c56 = arith.constant 56 : index
    %c0_40 = arith.constant 0 : index
    %65 = vector.load %arg8[%c56, %c0_40] : memref<72x256xf32, #tpu.memory_space<vmem>>, vector<8x256xf32>
    tpu.vector_store %arg8[%c56, %c0_40], %64 {strides = array<i32>} : memref<72x256xf32, #tpu.memory_space<vmem>>, vector<8x256xf32>,
    %c0_41 = arith.constant 0 : index
    %c34 = arith.constant 34 : index
    %66 = vector.load %arg7[%c0_41, %c34] : memref<8x290xf32, #tpu.memory_space<vmem>>, vector<8x256xf32>
    %cst_42 = arith.constant 0.000000e+00 : f32
    %67 = vector.shape_cast %22 : vector<1x256xi1> to vector<1x256xi1>
    %68 = vector.broadcast %67 : vector<1x256xi1> to vector<8x256xi1>
    %69 = vector.broadcast %cst_42 : f32 to vector<8x256xf32>
    %70 = arith.select %68, %66, %69 : vector<8x256xi1>, vector<8x256xf32>
    %c64 = arith.constant 64 : index
    %c0_43 = arith.constant 0 : index
    %71 = vector.load %arg8[%c64, %c0_43] : memref<72x256xf32, #tpu.memory_space<vmem>>, vector<8x256xf32>
    tpu.vector_store %arg8[%c64, %c0_43], %70 {strides = array<i32>} : memref<72x256xf32, #tpu.memory_space<vmem>>, vector<8x256xf32>,
    %c0_44 = arith.constant 0 : index
    %c0_45 = arith.constant 0 : index
    %72 = vector.load %arg8[%c0_44, %c0_45] : memref<72x256xf32, #tpu.memory_space<vmem>>, vector<72x256xf32>
    %cst_46 = arith.constant dense<0.000000e+00> : vector<8x256xf32>
    %73 = tpu.matmul %27, %72, %cst_46 {dimension_numbers = #tpu.dot_dimension_numbers<[1], [0], [0], [1], [0, 0, 1, 1], [], []>} : vector<8x72xf32>, vector<72x256xf32>, vector<8x256xf32> -> vector<8x256xf32>
    %74 = vector.broadcast %28 : vector<8x1xf32> to vector<8x256xf32>
    %75 = arith.addf %73, %74 : vector<8x256xf32>
    %cst_47 = arith.constant 0.000000e+00 : f32
    %76 = vector.broadcast %cst_47 : f32 to vector<8x256xf32>
    %77 = arith.maximumf %75, %76 : vector<8x256xf32>
    %c0_48 = arith.constant 0 : index
    %c0_49 = arith.constant 0 : index
    %78 = vector.load %arg4[%c0_48, %c0_49] : memref<8x72xf32, #tpu.memory_space<vmem>>, vector<8x72xf32>
    %c0_50 = arith.constant 0 : index
    %c0_51 = arith.constant 0 : index
    %79 = vector.load %arg5[%c0_50, %c0_51] : memref<8x1xf32, #tpu.memory_space<vmem>>, vector<8x1xf32>
    %c0_52 = arith.constant 0 : index
    %c17_53 = arith.constant 17 : index
    %80 = vector.load %arg7[%c0_52, %c17_53] : memref<8x290xf32, #tpu.memory_space<vmem>>, vector<8x256xf32>
    tpu.vector_store %arg7[%c0_52, %c17_53], %77 {strides = array<i32>} : memref<8x290xf32, #tpu.memory_space<vmem>>, vector<8x256xf32>,
    %c0_54 = arith.constant 0 : index
    %c0_55 = arith.constant 0 : index
    %81 = vector.load %arg7[%c0_54, %c0_55] : memref<8x290xf32, #tpu.memory_space<vmem>>, vector<8x256xf32>
    %cst_56 = arith.constant 0.000000e+00 : f32
    %82 = vector.shape_cast %20 : vector<1x256xi1> to vector<1x256xi1>
    %83 = vector.broadcast %82 : vector<1x256xi1> to vector<8x256xi1>
    %84 = vector.broadcast %cst_56 : f32 to vector<8x256xf32>
    %85 = arith.select %83, %81, %84 : vector<8x256xi1>, vector<8x256xf32>
    %c0_57 = arith.constant 0 : index
    %c0_58 = arith.constant 0 : index
    %86 = vector.load %arg8[%c0_57, %c0_58] : memref<72x256xf32, #tpu.memory_space<vmem>>, vector<8x256xf32>
    tpu.vector_store %arg8[%c0_57, %c0_58], %85 {strides = array<i32>} : memref<72x256xf32, #tpu.memory_space<vmem>>, vector<8x256xf32>,
    %c0_59 = arith.constant 0 : index
    %c1_60 = arith.constant 1 : index
    %87 = vector.load %arg7[%c0_59, %c1_60] : memref<8x290xf32, #tpu.memory_space<vmem>>, vector<8x256xf32>
    %c8_61 = arith.constant 8 : index
    %c0_62 = arith.constant 0 : index
    %88 = vector.load %arg8[%c8_61, %c0_62] : memref<72x256xf32, #tpu.memory_space<vmem>>, vector<8x256xf32>
    tpu.vector_store %arg8[%c8_61, %c0_62], %87 {strides = array<i32>} : memref<72x256xf32, #tpu.memory_space<vmem>>, vector<8x256xf32>,
    %c0_63 = arith.constant 0 : index
    %c2_64 = arith.constant 2 : index
    %89 = vector.load %arg7[%c0_63, %c2_64] : memref<8x290xf32, #tpu.memory_space<vmem>>, vector<8x256xf32>
    %cst_65 = arith.constant 0.000000e+00 : f32
    %90 = vector.shape_cast %22 : vector<1x256xi1> to vector<1x256xi1>
    %91 = vector.broadcast %90 : vector<1x256xi1> to vector<8x256xi1>
    %92 = vector.broadcast %cst_65 : f32 to vector<8x256xf32>
    %93 = arith.select %91, %89, %92 : vector<8x256xi1>, vector<8x256xf32>
    %c16_66 = arith.constant 16 : index
    %c0_67 = arith.constant 0 : index
    %94 = vector.load %arg8[%c16_66, %c0_67] : memref<72x256xf32, #tpu.memory_space<vmem>>, vector<8x256xf32>
    tpu.vector_store %arg8[%c16_66, %c0_67], %93 {strides = array<i32>} : memref<72x256xf32, #tpu.memory_space<vmem>>, vector<8x256xf32>,
    %c0_68 = arith.constant 0 : index
    %c16_69 = arith.constant 16 : index
    %95 = vector.load %arg7[%c0_68, %c16_69] : memref<8x290xf32, #tpu.memory_space<vmem>>, vector<8x256xf32>
    %cst_70 = arith.constant 0.000000e+00 : f32
    %96 = vector.shape_cast %20 : vector<1x256xi1> to vector<1x256xi1>
    %97 = vector.broadcast %96 : vector<1x256xi1> to vector<8x256xi1>
    %98 = vector.broadcast %cst_70 : f32 to vector<8x256xf32>
    %99 = arith.select %97, %95, %98 : vector<8x256xi1>, vector<8x256xf32>
    %c24_71 = arith.constant 24 : index
    %c0_72 = arith.constant 0 : index
    %100 = vector.load %arg8[%c24_71, %c0_72] : memref<72x256xf32, #tpu.memory_space<vmem>>, vector<8x256xf32>
    tpu.vector_store %arg8[%c24_71, %c0_72], %99 {strides = array<i32>} : memref<72x256xf32, #tpu.memory_space<vmem>>, vector<8x256xf32>,
    %c0_73 = arith.constant 0 : index
    %c17_74 = arith.constant 17 : index
    %101 = vector.load %arg7[%c0_73, %c17_74] : memref<8x290xf32, #tpu.memory_space<vmem>>, vector<8x256xf32>
    %c32_75 = arith.constant 32 : index
    %c0_76 = arith.constant 0 : index
    %102 = vector.load %arg8[%c32_75, %c0_76] : memref<72x256xf32, #tpu.memory_space<vmem>>, vector<8x256xf32>
    tpu.vector_store %arg8[%c32_75, %c0_76], %101 {strides = array<i32>} : memref<72x256xf32, #tpu.memory_space<vmem>>, vector<8x256xf32>,
    %c0_77 = arith.constant 0 : index
    %c18_78 = arith.constant 18 : index
    %103 = vector.load %arg7[%c0_77, %c18_78] : memref<8x290xf32, #tpu.memory_space<vmem>>, vector<8x256xf32>
    %cst_79 = arith.constant 0.000000e+00 : f32
    %104 = vector.shape_cast %22 : vector<1x256xi1> to vector<1x256xi1>
    %105 = vector.broadcast %104 : vector<1x256xi1> to vector<8x256xi1>
    %106 = vector.broadcast %cst_79 : f32 to vector<8x256xf32>
    %107 = arith.select %105, %103, %106 : vector<8x256xi1>, vector<8x256xf32>
    %c40_80 = arith.constant 40 : index
    %c0_81 = arith.constant 0 : index
    %108 = vector.load %arg8[%c40_80, %c0_81] : memref<72x256xf32, #tpu.memory_space<vmem>>, vector<8x256xf32>
    tpu.vector_store %arg8[%c40_80, %c0_81], %107 {strides = array<i32>} : memref<72x256xf32, #tpu.memory_space<vmem>>, vector<8x256xf32>,
    %c0_82 = arith.constant 0 : index
    %c32_83 = arith.constant 32 : index
    %109 = vector.load %arg7[%c0_82, %c32_83] : memref<8x290xf32, #tpu.memory_space<vmem>>, vector<8x256xf32>
    %cst_84 = arith.constant 0.000000e+00 : f32
    %110 = vector.shape_cast %20 : vector<1x256xi1> to vector<1x256xi1>
    %111 = vector.broadcast %110 : vector<1x256xi1> to vector<8x256xi1>
    %112 = vector.broadcast %cst_84 : f32 to vector<8x256xf32>
    %113 = arith.select %111, %109, %112 : vector<8x256xi1>, vector<8x256xf32>
    %c48_85 = arith.constant 48 : index
    %c0_86 = arith.constant 0 : index
    %114 = vector.load %arg8[%c48_85, %c0_86] : memref<72x256xf32, #tpu.memory_space<vmem>>, vector<8x256xf32>
    tpu.vector_store %arg8[%c48_85, %c0_86], %113 {strides = array<i32>} : memref<72x256xf32, #tpu.memory_space<vmem>>, vector<8x256xf32>,
    %c0_87 = arith.constant 0 : index
    %c33_88 = arith.constant 33 : index
    %115 = vector.load %arg7[%c0_87, %c33_88] : memref<8x290xf32, #tpu.memory_space<vmem>>, vector<8x256xf32>
    %c56_89 = arith.constant 56 : index
    %c0_90 = arith.constant 0 : index
    %116 = vector.load %arg8[%c56_89, %c0_90] : memref<72x256xf32, #tpu.memory_space<vmem>>, vector<8x256xf32>
    tpu.vector_store %arg8[%c56_89, %c0_90], %115 {strides = array<i32>} : memref<72x256xf32, #tpu.memory_space<vmem>>, vector<8x256xf32>,
    %c0_91 = arith.constant 0 : index
    %c34_92 = arith.constant 34 : index
    %117 = vector.load %arg7[%c0_91, %c34_92] : memref<8x290xf32, #tpu.memory_space<vmem>>, vector<8x256xf32>
    %cst_93 = arith.constant 0.000000e+00 : f32
    %118 = vector.shape_cast %22 : vector<1x256xi1> to vector<1x256xi1>
    %119 = vector.broadcast %118 : vector<1x256xi1> to vector<8x256xi1>
    %120 = vector.broadcast %cst_93 : f32 to vector<8x256xf32>
    %121 = arith.select %119, %117, %120 : vector<8x256xi1>, vector<8x256xf32>
    %c64_94 = arith.constant 64 : index
    %c0_95 = arith.constant 0 : index
    %122 = vector.load %arg8[%c64_94, %c0_95] : memref<72x256xf32, #tpu.memory_space<vmem>>, vector<8x256xf32>
    tpu.vector_store %arg8[%c64_94, %c0_95], %121 {strides = array<i32>} : memref<72x256xf32, #tpu.memory_space<vmem>>, vector<8x256xf32>,
    %c0_96 = arith.constant 0 : index
    %c0_97 = arith.constant 0 : index
    %123 = vector.load %arg8[%c0_96, %c0_97] : memref<72x256xf32, #tpu.memory_space<vmem>>, vector<72x256xf32>
    %cst_98 = arith.constant dense<0.000000e+00> : vector<8x256xf32>
    %124 = tpu.matmul %78, %123, %cst_98 {dimension_numbers = #tpu.dot_dimension_numbers<[1], [0], [0], [1], [0, 0, 1, 1], [], []>} : vector<8x72xf32>, vector<72x256xf32>, vector<8x256xf32> -> vector<8x256xf32>
    %125 = vector.broadcast %79 : vector<8x1xf32> to vector<8x256xf32>
    %126 = arith.addf %124, %125 : vector<8x256xf32>
    %127 = arith.addf %126, %1 : vector<8x256xf32>
    %cst_99 = arith.constant 0.000000e+00 : f32
    %128 = vector.broadcast %cst_99 : f32 to vector<8x256xf32>
    %129 = arith.maximumf %127, %128 : vector<8x256xf32>
    %c0_100 = arith.constant 0 : index
    %c0_101 = arith.constant 0 : index
    %c0_102 = arith.constant 0 : index
    %130 = vector.load %arg6[%c0_100, %c0_101, %c0_102] : memref<1x8x256xf32, #tpu.memory_space<vmem>>, vector<1x8x256xf32>
    %131 = vector.shape_cast %130 : vector<1x8x256xf32> to vector<8x256xf32>
    %132 = vector.shape_cast %129 : vector<8x256xf32> to vector<1x8x256xf32>
    tpu.vector_store %arg6[%c0_100, %c0_101, %c0_102], %132 {strides = array<i32>} : memref<1x8x256xf32, #tpu.memory_space<vmem>>, vector<1x8x256xf32>,
    return
  }
  func.func @transform_0(%arg0: i32) -> (i32, i32, i32) {
    %c0_i32 = arith.constant 0 : i32
    %c0_i32_0 = arith.constant 0 : i32
    %c0_i32_1 = arith.constant 0 : i32
    return %arg0, %c0_i32, %c0_i32_0 : i32, i32, i32
  }
  func.func @transform_1(%arg0: i32) -> (i32, i32) {
    %c0_i32 = arith.constant 0 : i32
    %c0_i32_0 = arith.constant 0 : i32
    %c0_i32_1 = arith.constant 0 : i32
    return %c0_i32, %c0_i32_0 : i32, i32
  }
  func.func @transform_2(%arg0: i32) -> (i32, i32) {
    %c0_i32 = arith.constant 0 : i32
    %c0_i32_0 = arith.constant 0 : i32
    %c0_i32_1 = arith.constant 0 : i32
    return %c0_i32, %c0_i32_0 : i32, i32
  }
  func.func @transform_3(%arg0: i32) -> (i32, i32) {
    %c0_i32 = arith.constant 0 : i32
    %c0_i32_0 = arith.constant 0 : i32
    %c0_i32_1 = arith.constant 0 : i32
    return %c0_i32, %c0_i32_0 : i32, i32
  }
  func.func @transform_4(%arg0: i32) -> (i32, i32) {
    %c0_i32 = arith.constant 0 : i32
    %c0_i32_0 = arith.constant 0 : i32
    %c0_i32_1 = arith.constant 0 : i32
    return %c0_i32, %c0_i32_0 : i32, i32
  }
  func.func @transform_5(%arg0: i32) -> (i32, i32, i32) {
    %c0_i32 = arith.constant 0 : i32
    %c0_i32_0 = arith.constant 0 : i32
    %c0_i32_1 = arith.constant 0 : i32
    return %arg0, %c0_i32, %c0_i32_0 : i32, i32, i32
  }
}

</mosaic_0001>

<bundles_post_ra>
// kernel: tpu_custom_call.1
= control target key start
LH: loop header
LB: loop body
LE: loop exit
PB: predicated region body
PF: predicated region fallthrough
CT: control target
= control target key end

     0   :  { %10 = vsyncpa [#allocation5], 0  ;;  %s1536_s0 = inlined_call_operand.hbm [shape: f32[2,8,256], index: 0, kind: input, shape index: {}]   ;;  %s1537_s1 = inlined_call_operand.vmem [shape: f32[8,72], index: 1, kind: input, shape index: {}]   ;;  %s1538_s2 = inlined_call_operand.vmem [shape: f32[8,1], index: 2, kind: input, shape index: {}]   ;;  %s1539_s3 = inlined_call_operand.vmem [shape: f32[8,72], index: 3, kind: input, shape index: {}]   ;;  %s1540_s4 = inlined_call_operand.vmem [shape: f32[8,1], index: 4, kind: input, shape index: {}]   ;;  %s1541_s5 = inlined_call_operand.hbm [shape: f32[2,8,256], index: 5, kind: output, shape index: {}]  }
   0x1   :  { %12 = vsyncpa [#allocation5 + $0x1], 0 }
   0x2   :  { %13 = vsyncpa [#allocation6], 0 }
   0x3   :  { %15 = vsyncpa [#allocation6 + $0x1], 0  ;;  %s1170_s18 = smov 0   ;;  %s1172_s19 = smov 0  }
   0x4   :  { %s1174_s20 = smov 0   ;;  %s1176_s21 = smov 0  }
   0x5 LB: > { %s1191_s22 = sadd.s32 4294967295, %s1125_s21   ;;  %s933_s23 = sadd.s32 4294967294, %s1125_s21   ;;  %s1125_s21 = sphi %s1176_s21, %s1566_s21   ;;  %s1121_s20 = sphi %s1174_s20, %s1565_s20   ;;  %s1117_s19 = sphi %s1172_s19, %s1564_s19   ;;  %s1113_s18 = sphi %s1170_s18, %s1563_s18  }
   0x6   : > { %s1195_s24 = sadd.s32 1, %s1125_s21   ;;  %s28_s25 = sadd.s32 1, %s1121_s20 }
   0x7   : > { %s25_s26 = ssub.s32 %s1125_s21, %s1195_s24  ;;  %p35_p0 = scmp.ne.s32.totalorder %s1121_s20, %s1117_s19 }
   0x8   : > { %p26_p1 = scmp.eq.s32.totalorder %s25_s26, 0  ;;  %p36_p2 = scmp.eq.s32.totalorder %s1125_s21, 0 }
   0x9   : > { %p41_p3 = scmp.ne.s32.totalorder %s1117_s19, %s1113_s18  ;;  %p42_p4 = scmp.eq.s32.totalorder %s1191_s22, 0 }
   0xa   : > { %s1207_s27 = scalar_select %p26_p1, %s1121_s20, %s28_s25  }
   0xb   : > { %p1209_p5 = por %p36_p2, %p35_p0  ;;  %p1213_p6 = por %p42_p4, %p41_p3 }
   0xc   : > { %p149_p7 = scmp.eq.s32.totalorder %s1191_s22, 1  ;;  %p155_p8 = scmp.eq.s32.totalorder %s933_s23, 1 }
   0xd   : > { %s1545_s29 = scalar_select %p1213_p6, 1, 0 }
   0xe   : > { %p987_p10 = scmp.lt.s32.totalorder %s1125_s21, 2  ;;  %p1220_p11 = por %p149_p7, %p35_p0 }
   0xf   : > { %p1224_p12 = por %p155_p8, %p41_p3  ;;  %s187_s7 = sand.u32 1, %s1121_s20  }
  0x10   : > { %s1546_s30 = scalar_select %p1220_p11, 1, 0 }
  0x11   : > { %s1547_s6 = scalar_select %p1224_p12, 1, 0 }
  0x12   : > { %s949_s8 = sshll.u32 %s1125_s21, 8  ;;  %s936_s9 = sshll.u32 %s187_s7, 4 }
  0x13   : > { %s1233_s12 = scalar_lea.hbm %s1536_s0, %s949_s8  ;;  %s191_s13 = scalar_lea.vmem [#allocation4], %s936_s9 }
  0x14   : > { %s199_s14 = sshll.u32 %s191_s13, 4  ;;  %p1237_p13 = pnand %p987_p10, %p1209_p5  ;;  %s1241_s14 = int_to_ptr.vmem [resolvable:$true] %s199_s14 }
  0x15   : > { %s188_s16 = scalar_lea.sflag [#allocation5], %s187_s7  ;;  %s1033_s17 = scalar_lea.hbm %s1233_s12, 256 }
  0x16   : > { %p1034_p2 = scmp.ne.s32.totalorder %s1233_s12, %s1033_s17  ;;  %p1035_p3 = pneg %p1237_p13 }
  0x17   : > { %s1038_s26 = scalar_lea.hbm %s1536_s0, 512  ;;  %p1039_p5 = scmp.lt.s32.totalorder %s1233_s12, %s1536_s0 }
  0x18   : > { %p1036_p4 = pnand %p1035_p3, %p1034_p2  ;;  %p1040_p8 = scmp.lt.s32.totalorder %s1038_s26, %s1033_s17 }
  0x1a   : > { %p1037_p7 = pneg %p1036_p4  ;;  %p1041_p10 = por %p1040_p8, %p1039_p5 }
  0x1c   : > { %p1042_p9 = pnand %p1041_p10, %p1037_p7 }
  0x1e   : > { %1045 = shalt.err (!%p1042_p9)
}
  0x1f   : > { %s1046_s7 = scalar_lea.vmem %s1241_s14, 256  ;;  %s1127_s9 = smov [#allocation4]  }
  0x20   : > { %p1047_p0 = scmp.ne.s32.totalorder %s1241_s14, %s1046_s7  ;;  %s1051_s10 = sshll.u32 %s1127_s9, 4  ;;  %s1052_s10 = int_to_ptr.vmem [resolvable:$false] %s1051_s10 }
  0x21   : > { %s1053_s11 = scalar_lea.vmem %s1052_s10, 512  ;;  %p1054_p4 = scmp.lt.s32.totalorder %s1241_s14, %s1052_s10 }
  0x22   : > { %p1049_p1 = pnand %p1047_p0, %p1035_p3  ;;  %p1055_p12 = scmp.lt.s32.totalorder %s1053_s11, %s1046_s7 }
  0x24   : > { %p1050_p2 = pneg %p1049_p1  ;;  %p1056_p11 = por %p1055_p12, %p1054_p4 }
  0x26   : > { %p1057_p6 = pnand %p1056_p11, %p1050_p2 }
  0x28   : > { %1060 = shalt.err (!%p1057_p6)
}
  0x29   : > { %982 = dma.hbm_to_vmem [thread:$0]  (!%p1237_p13), %s1233_s12, 256, %s1241_s14, %s188_s16  }
  0x2a   : > { %p1549_p9 = scmp.lt.s32.totalorder %s1125_s21, 3  ;;  %p1550_p7 = scmp.ge.s32.totalorder %s1125_s21, 1 }
  0x2c   : > { %p205_p0 = pnand %p1550_p7, %p1549_p9 }
  0x2d   : > { %s1268_s13 = sand.u32 (!%p205_p0), 1, %s1117_s19   ;;  %p1551_p6 = scmp.ne.s32.totalorder (!%p205_p0), %s1545_s29, 0 }
  0x2e   : > { %208 = sbr.rel (%p205_p0) target bundleno = 1046 (0x416), region = 40  ;;  %s940_s17 = sshll.u32 (!%p205_p0), %s1268_s13, 4 }
  0x2f   : > { %s211_s23 = scalar_lea.sflag (!%p205_p0), [#allocation5], %s1268_s13  ;;  %s214_s15 = scalar_lea.vmem (!%p205_p0), [#allocation4], %s940_s17 }
  0x33   : > { %1104 = dma.done.wait (%p1551_p6), %s211_s23, 256  }
  0x34   : > { %1106 = vsyncadd (%p1551_p6), %s211_s23, 4294967040  ;;  %vm274_vm0 = vcmask 138240   ;;  %vm276_vm1 = vcmask 277640   ;;  %v1128_v0 = vmov 0.0   ;;  %v1279_v1 = vld [vmem:[%s214_s15] sm:$0xff]  ;;  %s1129_s12 = smov 17   ;;  %v243_v17 = vlaneseq }
  0x35   : > { %275 = vst.msk [vmem:[#allocation2] sm:$0xff] %vm274_vm0, %v1128_v0  ;;  %561 = vmatprep.mubr.f32.mxu0 %v1128_v0  ;;  %835 = vmatprep.mubr.f32.mxu1 %v1128_v0  ;;  %v1283_v2 = vld [vmem:[%s214_s15 + $0x8] sm:$0xff]  ;;  %vm290_vm2 = vcmask 1047688   ;;  %s1130_s29 = smov 94   ;;  %s1131_s14 = smov 95   ;;  %v1138_v9 = vmov 0  }
  0x36   : > { %277 = vst.msk [vmem:[#allocation2 + $0x10] sm:$0xff] %vm276_vm1, %v1128_v0  ;;  %282 = vrot.lane.b32.xlu0 %v1279_v1, %s1129_s12  ;;  %s1132_s16 = smov 96   ;;  %s1133_s25 = smov 110   ;;  %v279_v8 = vld [vmem:[%s1538_s2] sm:$0xff]  ;;  %v244_v20 = vand.u32 127, %v243_v17  ;;  %vm461_vm3 = vcmask 769024  }
  0x37   : > { %s1134_s26 = smov 111   ;;  %s1135_s28 = smov 112   ;;  %1032 = vset.pattern.permute.xlu0 %v1138_v9  ;;  %vm442_vm6 = vcmask 777216   ;;  %vm421_vm7 = vcmask 785408   ;;  %vm400_vm9 = vcmask 900096   ;;  %vm381_vm11 = vcmask 908288  }
  0x38   : > { %s1136_s8 = smov 126   ;;  %s1137_s7 = smov 127   ;;  %v245_v23 = vadd.s32 128, %v244_v20  ;;  %v250_v28 = vand.u32 15, %v244_v20  ;;  %vm360_vm12 = vcmask 916480   ;;  %vm339_vm13 = vcmask 1031168  }
  0x39   : > { %vm316_vm14 = vcmask 1039360   ;;  %v278_v59 = vld [vmem:[%s1537_s1] sm:$0xff]  ;;  %vm493_vm15 = vcmask 588800   ;;  %s849_s9 = scalar_lea.sflag [#allocation6], %s1268_s13  ;;  %p1560_p12 = scmp.ne.s32.totalorder %s1546_s30, 0 }
  0x3a   : > { %284 = vrot.lane.b32.xlu0 %v1283_v2, %s1129_s12  ;;  %v257_v26 = vand.u32 15, %v245_v23  ;;  %vm1341_vm5 = vcmp.lt.s32.totalorder %v250_v28, 15  ;;  %vm1357_vm10 = vcmp.ge.s32.totalorder %v250_v28, 1 }
  0x3c   : > { %vm1337_vm4 = vcmp.lt.s32.totalorder %v257_v26, 15  ;;  %vm1353_vm8 = vcmp.ge.s32.totalorder %v257_v26, 1 }
  0xa8   : > { %v283_v3 = vpop.permute.xlu0 %282 }
  0xa9   : > { %291 = vst.msk [vmem:[#allocation2] sm:$0xff] %vm290_vm2, %v283_v3 }
  0xac   : > { %v285_v4 = vpop.permute.xlu0 %284 }
  0xad   : > { %293 = vst.msk [vmem:[#allocation2 + $0x10] sm:$0xff] %vm274_vm0, %v285_v4  ;;  %v1312_v7 = vsel %vm274_vm0, %v283_v3, %v285_v4 }
  0xb0   : > { %v1289_v5 = vld [vmem:[#allocation2] sm:$0xff] }
  0xb1   : > { %455 = vrot.lane.b32.xlu0 %v1289_v5, %s1130_s29 }
  0xb4   : > { %v451_v6 = vld [vmem:[#allocation2 + $0x10] sm:$0xff] }
  0xb5   : > { %459 = vrot.lane.b32.xlu1 %v451_v6, %s1130_s29  ;;  %440 = vrot.lane.b32.xlu0 %v451_v6, %s1131_s14 }
  0xb9   : > { %436 = vrot.lane.b32.xlu1 %v1289_v5, %s1131_s14  ;;  %415 = vrot.lane.b32.xlu0 %v1289_v5, %s1132_s16 }
  0xbd   : > { %419 = vrot.lane.b32.xlu1 %v451_v6, %s1132_s16  ;;  %398 = vrot.lane.b32.xlu0 %v451_v6, %s1133_s25 }
  0xc1   : > { %394 = vrot.lane.b32.xlu1 %v1289_v5, %s1133_s25  ;;  %375 = vrot.lane.b32.xlu0 %v1289_v5, %s1134_s26 }
  0xc5   : > { %379 = vrot.lane.b32.xlu1 %v451_v6, %s1134_s26  ;;  %358 = vrot.lane.b32.xlu0 %v451_v6, %s1135_s28 }
  0xc9   : > { %354 = vrot.lane.b32.xlu1 %v1289_v5, %s1135_s28  ;;  %333 = vrot.lane.b32.xlu0 %v1289_v5, %s1136_s8 }
  0xcd   : > { %337 = vrot.lane.b32.xlu1 %v451_v6, %s1136_s8  ;;  %417 = vrot.lane.b32.xlu0 %v1312_v7, %s1132_s16 }
  0xd1   : > { %457 = vrot.lane.b32.xlu1 %v1312_v7, %s1130_s29  ;;  %377 = vrot.lane.b32.xlu0 %v1312_v7, %s1134_s26 }
  0xd5   : > { %438 = vrot.lane.b32.xlu1 %v1312_v7, %s1131_s14  ;;  %335 = vrot.lane.b32.xlu0 %v1312_v7, %s1136_s8 }
  0xd9   : > { %396 = vrot.lane.b32.xlu1 %v1312_v7, %s1133_s25  ;;  %314 = vrot.lane.b32.xlu0 %v451_v6, %s1137_s7 }
  0xdd   : > { %356 = vrot.lane.b32.xlu1 %v1312_v7, %s1135_s28  ;;  %490 = vperm.xlu0 %1032, %v279_v8  }
  0xe1   : > { %312 = vrot.lane.b32.xlu1 %v1312_v7, %s1137_s7 }
  0xe5   : > { %310 = vrot.lane.b32.xlu1 %v1289_v5, %s1137_s7 }
 0x123   : > { %v456_v10 = vpop.permute.xlu0 %455 }
 0x127   : > { %v460_v11 = vpop.permute.xlu1 %459  ;;  %v441_v12 = vpop.permute.xlu0 %440 }
 0x12b   : > { %v437_v13 = vpop.permute.xlu1 %436  ;;  %v416_v14 = vpop.permute.xlu0 %415 }
 0x12f   : > { %v420_v15 = vpop.permute.xlu1 %419  ;;  %v399_v16 = vpop.permute.xlu0 %398 }
 0x133   : > { %v395_v18 = vpop.permute.xlu1 %394  ;;  %v376_v19 = vpop.permute.xlu0 %375 }
 0x137   : > { %v380_v21 = vpop.permute.xlu1 %379  ;;  %v359_v22 = vpop.permute.xlu0 %358 }
 0x13b   : > { %v355_v24 = vpop.permute.xlu1 %354  ;;  %v334_v25 = vpop.permute.xlu0 %333 }
 0x13f   : > { %v338_v27 = vpop.permute.xlu1 %337  ;;  %v418_v29 = vpop.permute.xlu0 %417 }
 0x140   : > { %v423_v41 = vsel %vm421_vm7, %v418_v29, %v420_v15  ;;  %v422_v42 = vsel %vm421_vm7, %v416_v14, %v418_v29 }
 0x143   : > { %v458_v31 = vpop.permute.xlu1 %457  ;;  %v378_v35 = vpop.permute.xlu0 %377 }
 0x144   : > { %v463_v33 = vsel %vm461_vm3, %v458_v31, %v460_v11  ;;  %v462_v34 = vsel %vm461_vm3, %v456_v10, %v458_v31  ;;  %v383_v47 = vsel %vm381_vm11, %v378_v35, %v380_v21  ;;  %v382_v49 = vsel %vm381_vm11, %v376_v19, %v378_v35  ;;  %v571_v10 = vld [vmem:[%s1540_s4] sm:$0xff] }
 0x145   : > { %951 = vmatprep.subr.msk.mxu0 %vm1337_vm4, %v463_v33 }
 0x146   : > { %952 = vmatpush1.msk.msra.mxu0 %vm1341_vm5, %v462_v34 }
 0x147   : > { %v439_v36 = vpop.permute.xlu1 %438  ;;  %v336_v46 = vpop.permute.xlu0 %335 }
 0x148   : > { %v444_v37 = vsel %vm442_vm6, %v439_v36, %v441_v12  ;;  %v443_v38 = vsel %vm442_vm6, %v437_v13, %v439_v36  ;;  %v341_v52 = vsel %vm339_vm13, %v336_v46, %v338_v27  ;;  %v340_v53 = vsel %vm339_vm13, %v334_v25, %v336_v46 }
 0x149   : > { %513 = vmatprep.subr.mxu0 %v444_v37 }
 0x14a   : > { %514 = vmatpush1.msra.mxu0 %v443_v38 }
 0x14b   : > { %v397_v43 = vpop.permute.xlu1 %396  ;;  %953 = vmatprep.subr.msk.mxu0 %vm1353_vm8, %v423_v41  ;;  %v315_v54 = vpop.permute.xlu0 %314 }
 0x14c   : > { %v401_v44 = vsel %vm400_vm9, %v395_v18, %v397_v43  ;;  %v402_v45 = vsel %vm400_vm9, %v397_v43, %v399_v16  ;;  %954 = vmatpush1.msk.msra.mxu0 %vm1357_vm10, %v422_v42 }
 0x14d   : > { %955 = vmatprep.subr.msk.mxu0 %vm1337_vm4, %v402_v45 }
 0x14e   : > { %956 = vmatpush1.msk.msra.mxu0 %vm1341_vm5, %v401_v44 }
 0x14f   : > { %v357_v48 = vpop.permute.xlu1 %356  ;;  %519 = vmatprep.subr.mxu0 %v383_v47 }
 0x150   : > { %v361_v50 = vsel %vm360_vm12, %v355_v24, %v357_v48  ;;  %v362_v51 = vsel %vm360_vm12, %v357_v48, %v359_v22  ;;  %520 = vmatpush1.msra.mxu0 %v382_v49 }
 0x151   : > { %957 = vmatprep.subr.msk.mxu0 %vm1353_vm8, %v362_v51 }
 0x152   : > { %958 = vmatpush1.msk.msra.mxu0 %vm1357_vm10, %v361_v50 }
 0x153   : > { %v313_v55 = vpop.permute.xlu1 %312  ;;  %959 = vmatprep.subr.msk.mxu0 %vm1337_vm4, %v341_v52 }
 0x154   : > { %960 = vmatpush1.msk.msra.mxu0 %vm1341_vm5, %v340_v53  ;;  %v318_v56 = vsel %vm316_vm14, %v313_v55, %v315_v54 }
 0x155   : > { %525 = vmatprep.subr.mxu0 %v318_v56 }
 0x157   : > { %v311_v57 = vpop.permute.xlu1 %310 }
 0x158   : > { %v317_v58 = vsel %vm316_vm14, %v311_v57, %v313_v55  ;;  %v491_v60 = vpop.permute.xlu0 %490  ;;  %v570_v55 = vld [vmem:[%s1539_s3] sm:$0xff] }
 0x159   : > { %526 = vmatpush1.msra.mxu0 %v317_v58 }
 0x15a   : > { %961 = vmatprep.subr.msk.mxu0 %vm1353_vm8, %v1312_v7 }
 0x15b   : > { %962 = vmatpush1.msk.msra.mxu0 %vm1357_vm10, %v1289_v5 }
 0x15c   : > { %942 = vmatmul.mubr.msk.f32.vlgmr.msra.gmra.mxu0 %vm493_vm15, %v278_v59 }
 0x21c   : > { %v563_v61 = vpop.f32.mrf.mxu0 }
 0x21d   : > { %v564_v62 = vadd.f32 %v563_v61, %v491_v60 }
 0x21e   : > { %v565_v63 = vpop.f32.mrf.mxu0 }
 0x21f   : > { %v568_v0 = vmax.f32 %v564_v62, 0.0  ;;  %v566_v3 = vadd.f32 %v565_v63, %v491_v60 }
 0x221   : > { %574 = vrot.lane.b32.xlu1 %v568_v0, %s1129_s12  ;;  %v569_v4 = vmax.f32 %v566_v3, 0.0 }
 0x225   : > { %576 = vrot.lane.b32.xlu1 %v569_v4, %s1129_s12 }
 0x293   : > { %v575_v6 = vpop.permute.xlu1 %574 }
 0x294   : > { %582 = vst.msk [vmem:[#allocation2] sm:$0xff] %vm290_vm2, %v575_v6 }
 0x297   : > { %v577_v7 = vpop.permute.xlu1 %576 }
 0x298   : > { %v1403_v8 = vsel %vm274_vm0, %v575_v6, %v577_v7  ;;  %584 = vst.msk [vmem:[#allocation2 + $0x10] sm:$0xff] %vm274_vm0, %v577_v7 }
 0x29b   : > { %v1406_v5 = vld [vmem:[#allocation2] sm:$0xff] }
 0x29c   : > { %731 = vrot.lane.b32.xlu0 %v1406_v5, %s1130_s29  ;;  %713 = vrot.lane.b32.xlu1 %v1406_v5, %s1131_s14 }
 0x29f   : > { %v727_v9 = vld [vmem:[#allocation2 + $0x10] sm:$0xff] }
 0x2a0   : > { %693 = vrot.lane.b32.xlu0 %v1406_v5, %s1132_s16  ;;  %673 = vrot.lane.b32.xlu1 %v1406_v5, %s1133_s25 }
 0x2a4   : > { %655 = vrot.lane.b32.xlu0 %v1406_v5, %s1134_s26  ;;  %635 = vrot.lane.b32.xlu1 %v1406_v5, %s1135_s28 }
 0x2a8   : > { %615 = vrot.lane.b32.xlu0 %v1406_v5, %s1136_s8  ;;  %735 = vrot.lane.b32.xlu1 %v727_v9, %s1130_s29 }
 0x2ac   : > { %717 = vrot.lane.b32.xlu0 %v727_v9, %s1131_s14  ;;  %697 = vrot.lane.b32.xlu1 %v727_v9, %s1132_s16 }
 0x2b0   : > { %677 = vrot.lane.b32.xlu0 %v727_v9, %s1133_s25  ;;  %659 = vrot.lane.b32.xlu1 %v727_v9, %s1134_s26 }
 0x2b4   : > { %639 = vrot.lane.b32.xlu0 %v727_v9, %s1135_s28  ;;  %619 = vrot.lane.b32.xlu1 %v727_v9, %s1136_s8 }
 0x2b8   : > { %733 = vrot.lane.b32.xlu0 %v1403_v8, %s1130_s29  ;;  %715 = vrot.lane.b32.xlu1 %v1403_v8, %s1131_s14 }
 0x2bc   : > { %695 = vrot.lane.b32.xlu0 %v1403_v8, %s1132_s16  ;;  %675 = vrot.lane.b32.xlu1 %v1403_v8, %s1133_s25  ;;  %s950_s16 = sshll.u32 %s1191_s22, 8  ;;  %s240_s25 = scalar_lea.vmem [#allocation7], %s940_s17 }
 0x2bd   : > { %s1139_s22 = smov [#allocation7]  }
 0x2be   : > { %s1065_s17 = sshll.u32 %s1139_s22, 4  ;;  %s1066_s17 = int_to_ptr.vmem [resolvable:$false] %s1065_s17 }
 0x2bf   : > { %s1067_s11 = scalar_lea.vmem %s1066_s17, 512 }
 0x2c0   : > { %657 = vrot.lane.b32.xlu0 %v1403_v8, %s1134_s26  ;;  %637 = vrot.lane.b32.xlu1 %v1403_v8, %s1135_s28  ;;  %s863_s26 = sshll.u32 %s240_s25, 4  ;;  %s864_s26 = int_to_ptr.vmem [resolvable:$true] %s863_s26 }
 0x2c1   : > { %s1061_s10 = scalar_lea.vmem %s864_s26, 256  ;;  %p1068_p3 = scmp.lt.s32.totalorder %s864_s26, %s1066_s17 }
 0x2c2   : > { %p1062_p11 = scmp.ne.s32.totalorder %s864_s26, %s1061_s10  ;;  %p1069_p5 = scmp.lt.s32.totalorder %s1067_s11, %s1061_s10 }
 0x2c4   : > { %617 = vrot.lane.b32.xlu0 %v1403_v8, %s1136_s8  ;;  %599 = vrot.lane.b32.xlu1 %v1403_v8, %s1137_s7  ;;  %p1063_p13 = pnand %p1062_p11, %p1560_p12  ;;  %p1070_p8 = por %p1069_p5, %p1068_p3 }
 0x2c6   : > { %p1064_p1 = pneg %p1063_p13 }
 0x2c8   : > { %601 = vrot.lane.b32.xlu0 %v727_v9, %s1137_s7  ;;  %597 = vrot.lane.b32.xlu1 %v1406_v5, %s1137_s7  ;;  %s861_s7 = scalar_lea.hbm %s1541_s5, %s950_s16  ;;  %p1071_p10 = pnand %p1070_p8, %p1064_p1 }
 0x2cc   : > { %765 = vperm.xlu0 %1032, %v571_v10  }
 0x30e   : > { %v732_v11 = vpop.permute.xlu0 %731  ;;  %v714_v12 = vpop.permute.xlu1 %713 }
 0x312   : > { %v694_v13 = vpop.permute.xlu0 %693  ;;  %v674_v14 = vpop.permute.xlu1 %673 }
 0x316   : > { %v656_v15 = vpop.permute.xlu0 %655  ;;  %v636_v16 = vpop.permute.xlu1 %635 }
 0x31a   : > { %v616_v17 = vpop.permute.xlu0 %615  ;;  %v736_v18 = vpop.permute.xlu1 %735 }
 0x31e   : > { %v718_v19 = vpop.permute.xlu0 %717  ;;  %v698_v20 = vpop.permute.xlu1 %697 }
 0x322   : > { %v678_v21 = vpop.permute.xlu0 %677  ;;  %v660_v22 = vpop.permute.xlu1 %659 }
 0x326   : > { %v640_v23 = vpop.permute.xlu0 %639  ;;  %v620_v24 = vpop.permute.xlu1 %619 }
 0x32a   : > { %v734_v25 = vpop.permute.xlu0 %733  ;;  %v716_v26 = vpop.permute.xlu1 %715 }
 0x32b   : > { %v738_v27 = vsel %vm461_vm3, %v734_v25, %v736_v18  ;;  %v737_v28 = vsel %vm461_vm3, %v732_v11, %v734_v25  ;;  %v720_v29 = vsel %vm442_vm6, %v716_v26, %v718_v19  ;;  %v719_v34 = vsel %vm442_vm6, %v714_v12, %v716_v26 }
 0x32c   : > { %963 = vmatprep.subr.msk.mxu1 %vm1337_vm4, %v738_v27 }
 0x32d   : > { %964 = vmatpush1.msk.msra.mxu1 %vm1341_vm5, %v737_v28 }
 0x32e   : > { %v696_v31 = vpop.permute.xlu0 %695  ;;  %787 = vmatprep.subr.mxu1 %v720_v29  ;;  %v676_v33 = vpop.permute.xlu1 %675 }
 0x32f   : > { %v699_v35 = vsel %vm421_vm7, %v694_v13, %v696_v31  ;;  %v700_v36 = vsel %vm421_vm7, %v696_v31, %v698_v20  ;;  %788 = vmatpush1.msra.mxu1 %v719_v34  ;;  %v680_v37 = vsel %vm400_vm9, %v676_v33, %v678_v21  ;;  %v679_v38 = vsel %vm400_vm9, %v674_v14, %v676_v33 }
 0x330   : > { %965 = vmatprep.subr.msk.mxu1 %vm1353_vm8, %v700_v36 }
 0x331   : > { %966 = vmatpush1.msk.msra.mxu1 %vm1357_vm10, %v699_v35 }
 0x332   : > { %v658_v41 = vpop.permute.xlu0 %657  ;;  %967 = vmatprep.subr.msk.mxu1 %vm1337_vm4, %v680_v37  ;;  %v638_v42 = vpop.permute.xlu1 %637 }
 0x333   : > { %968 = vmatpush1.msk.msra.mxu1 %vm1341_vm5, %v679_v38  ;;  %v662_v43 = vsel %vm381_vm11, %v658_v41, %v660_v22  ;;  %v661_v44 = vsel %vm381_vm11, %v656_v15, %v658_v41  ;;  %v642_v45 = vsel %vm360_vm12, %v638_v42, %v640_v23  ;;  %v641_v46 = vsel %vm360_vm12, %v636_v16, %v638_v42 }
 0x334   : > { %793 = vmatprep.subr.mxu1 %v662_v43 }
 0x335   : > { %794 = vmatpush1.msra.mxu1 %v661_v44 }
 0x336   : > { %v618_v47 = vpop.permute.xlu0 %617  ;;  %969 = vmatprep.subr.msk.mxu1 %vm1353_vm8, %v642_v45  ;;  %v600_v48 = vpop.permute.xlu1 %599 }
 0x337   : > { %v621_v49 = vsel %vm339_vm13, %v616_v17, %v618_v47  ;;  %v622_v50 = vsel %vm339_vm13, %v618_v47, %v620_v24  ;;  %970 = vmatpush1.msk.msra.mxu1 %vm1357_vm10, %v641_v46 }
 0x338   : > { %971 = vmatprep.subr.msk.mxu1 %vm1337_vm4, %v622_v50 }
 0x339   : > { %972 = vmatpush1.msk.msra.mxu1 %vm1341_vm5, %v621_v49 }
 0x33a   : > { %v602_v51 = vpop.permute.xlu0 %601  ;;  %v598_v52 = vpop.permute.xlu1 %597 }
 0x33b   : > { %v604_v53 = vsel %vm316_vm14, %v600_v48, %v602_v51  ;;  %v603_v54 = vsel %vm316_vm14, %v598_v52, %v600_v48 }
 0x33c   : > { %799 = vmatprep.subr.mxu1 %v604_v53 }
 0x33d   : > { %800 = vmatpush1.msra.mxu1 %v603_v54 }
 0x33e   : > { %973 = vmatprep.subr.msk.mxu1 %vm1353_vm8, %v1403_v8 }
 0x33f   : > { %974 = vmatpush1.msk.msra.mxu1 %vm1357_vm10, %v1406_v5 }
 0x340   : > { %943 = vmatmul.mubr.msk.f32.vlgmr.msra.gmra.mxu1 %vm493_vm15, %v570_v55 }
 0x347   : > { %v766_v30 = vpop.permute.xlu0 %765 }
 0x400   : > { %v837_v32 = vpop.f32.mrf.mxu1 }
 0x401   : > { %v838_v56 = vadd.f32 %v837_v32, %v766_v30 }
 0x402   : > { %v839_v57 = vpop.f32.mrf.mxu1 }
 0x403   : > { %v842_v58 = vadd.f32 %v838_v56, %v1279_v1  ;;  %v840_v59 = vadd.f32 %v839_v57, %v766_v30 }
 0x405   : > { %v844_v39 = vmax.f32 %v842_v58, 0.0  ;;  %v843_v60 = vadd.f32 %v840_v59, %v1283_v2 }
 0x407   : > { %846 = vst [vmem:[%s240_s25] sm:$0xff] %v844_v39  ;;  %v845_v40 = vmax.f32 %v843_v60, 0.0 }
 0x409   : > { %847 = vst [vmem:[%s240_s25 + $0x8] sm:$0xff] %v845_v40 }
 0x40a   : > { %1074 = shalt.err (!%p1071_p10)
}
 0x40b   : > { %s1075_s23 = scalar_lea.hbm %s861_s7, 256  ;;  %s1079_s12 = scalar_lea.hbm %s1541_s5, 512 }
 0x40c   : > { %p1076_p2 = scmp.ne.s32.totalorder %s861_s7, %s1075_s23  ;;  %p1080_p7 = scmp.lt.s32.totalorder %s861_s7, %s1541_s5 }
 0x40d   : > { %p1081_p0 = scmp.lt.s32.totalorder %s1079_s12, %s1075_s23 }
 0x40e   : > { %p1077_p4 = pnand %p1076_p2, %p1560_p12 }
 0x40f   : > { %p1082_p6 = por %p1081_p0, %p1080_p7 }
 0x410   : > { %p1078_p9 = pneg %p1077_p4 }
 0x412   : > { %p1083_p11 = pnand %p1082_p6, %p1078_p9 }
 0x414   : > { %1086 = shalt.err (!%p1083_p11)
}
 0x415   : > { %977 = dma.vmem_to_hbm [thread:$0]  (%p1560_p12), %s864_s26, 256, %s861_s7, %s849_s9  }
 0x416 PF: > { %s875_s16 = sand.u32 1, %s1113_s18   ;;  %p1561_p13 = scmp.ne.s32.totalorder %s1547_s6, 0 }
 0x417   : > { %p1562_p1 = scmp.ge.s32.totalorder %s1125_s21, 2  ;;  %s876_s25 = scalar_lea.sflag [#allocation6], %s875_s16 }
 0x419   : > { %p984_p3 = pnand %p1562_p1, %p1561_p13 }
 0x41b   : > { %p985_p5 = pneg %p984_p3 }
 0x41d   : > { %1108 = dma.done.wait (%p985_p5), %s876_s25, 256  }
 0x41e   : > { %1110 = vsyncadd (%p985_p5), %s876_s25, 4294967040  ;;  %p18_p8 = scmp.ge.s32.totalorder %s1195_s24, 4   ;;  %s1563_s18 = smov %s1117_s19 }
 0x41f   : > { %s1564_s19 = smov %s1121_s20  ;;  %s1565_s20 = smov %s1207_s27 }
 0x420   : > { %s1566_s21 = smov %s1195_s24  ;;  %20 = sbr.rel (!%p18_p8) target bundleno = 5 (0x5), region = 85 }
 0x425   :  { %881 = vsyncpa [#allocation5], 1 }
 0x426   :  { %883 = vsyncpa [#allocation5 + $0x1], 1 }
 0x427   :  { %884 = vsyncpa [#allocation6], 1 }
 0x428   :  { %886 = vsyncpa [#allocation6 + $0x1], 1 }

</bundles_post_ra>
